<compile_context>
chip_gen: v6e
topology: v6e:2x2x1
jax: 0.10.0
libtpu: 0.0.40
codegen_flags: <defaults>
</compile_context>

<pallas_src>
import functools

import jax
import jax.numpy as jnp
from jax.experimental import pallas as pl
from jax.experimental.pallas import tpu as pltpu


def _pick_q_tile(n):
    """Choose a query-row tile: full N when small, else a big divisor of N."""
    if n <= 512:
        return n
    for t in (512, 256, 128, 64, 32, 16, 8):
        if n % t == 0:
            return t
    return n  # ragged N: fall back to a single tile


def _attend(x_q, y_kv, wq, wk, wv, H, dq, dv, o_ref):
    """Core fused-head attention for one (batch, query-tile) grid cell.

    x_q:  (tq, D) query rows.
    y_kv: (N, D)  key/value source rows.
    wq:   (D, qk_dim)  -- softmax scale already folded in.
    wk:   (D, qk_dim)
    wv:   (D, D)
    o_ref: (1, tq, D) output block, 'b n (h d)' layout.
    """
    cdt = x_q.dtype  # matmul operand dtype (bf16 inputs stay on the bf16 MXU path)

    # Head-fused projections (wide MXU ops), f32 accumulation.
    q = jnp.dot(x_q, wq, preferred_element_type=jnp.float32).astype(cdt)   # (tq, qk)
    k = jnp.dot(y_kv, wk, preferred_element_type=jnp.float32).astype(cdt)  # (N,  qk)
    v = jnp.dot(y_kv, wv, preferred_element_type=jnp.float32).astype(cdt)  # (N,  D)

    outs = []
    for h in range(H):  # static unroll over heads (H is small & compile-time)
        qh = q[:, h * dq:(h + 1) * dq]          # (tq, dq)
        kh = k[:, h * dq:(h + 1) * dq]          # (N,  dq)
        vh = v[:, h * dv:(h + 1) * dv]          # (N,  dv)

        s = jnp.dot(qh, kh.T, preferred_element_type=jnp.float32)          # (tq, N)
        s = s - jnp.max(s, axis=-1, keepdims=True)
        p = jnp.exp(s)
        p = p * pl.reciprocal(jnp.sum(p, axis=-1, keepdims=True), approx=True)

        outs.append(jnp.dot(p.astype(cdt), vh,
                            preferred_element_type=jnp.float32))           # (tq, dv)

    # Concatenate heads along channels -> exactly 'b h n d -> b n (h d)'.
    out = jnp.concatenate(outs, axis=-1)        # (tq, D), lane-dense store
    o_ref[0] = out.astype(o_ref.dtype)


def _self_attn_kernel(tq, H, dq, dv, x_ref, wq_ref, wk_ref, wv_ref, o_ref):
    # x is passed once and serves as both the query and key/value source.
    x = x_ref[0]                                # (N, D)
    if tq == x.shape[0]:
        x_q = x
    else:
        qi = pl.program_id(1)
        x_q = x_ref[0, pl.ds(pl.multiple_of(qi * tq, tq), tq), :]
    _attend(x_q, x, wq_ref[...], wk_ref[...], wv_ref[...], H, dq, dv, o_ref)


def _cross_attn_kernel(H, dq, dv, x_ref, y_ref, wq_ref, wk_ref, wv_ref, o_ref):
    _attend(x_ref[0], y_ref[0], wq_ref[...], wk_ref[...], wv_ref[...],
            H, dq, dv, o_ref)


def attention_pallas(x, wq, wk, wv, heads, qk_dim, y=None):
    """Multi-head attention matching the PyTorch HPINet Attention module.

    Args:
      x:  (B, N, D) query features.
      wq: (D, qk_dim) projection (transposed to in-major, i.e. x @ wq).
      wk: (D, qk_dim)
      wv: (D, D)
      heads: number of heads.
      qk_dim: total q/k channels.
      y:  optional (B, N, D) support features (cross-attention). None => self-attn.
    Returns:
      (B, N, D) output features in 'b n (h d)' layout.
    """
    B, N, D = x.shape
    H = heads
    dq = qk_dim // H
    dv = D // H
    scale = float(qk_dim) ** (-0.5)             # matches torch: scale uses full qk_dim
    wq_s = (wq * scale).astype(wq.dtype)        # fold scale into Wq on the host

    tq = _pick_q_tile(N)
    nq = N // tq

    if y is None:
        kernel = functools.partial(_self_attn_kernel, tq, H, dq, dv)
        in_specs = [
            pl.BlockSpec((1, N, D), lambda b, qi: (b, 0, 0)),       # x (q + kv source)
            pl.BlockSpec((D, qk_dim), lambda b, qi: (0, 0)),        # Wq * scale
            pl.BlockSpec((D, qk_dim), lambda b, qi: (0, 0)),        # Wk
            pl.BlockSpec((D, D), lambda b, qi: (0, 0)),             # Wv
        ]
        operands = (x, wq_s, wk, wv)
    else:
        kernel = functools.partial(_cross_attn_kernel, H, dq, dv)
        in_specs = [
            pl.BlockSpec((1, tq, D), lambda b, qi: (b, qi, 0)),     # x query tile
            pl.BlockSpec((1, N, D), lambda b, qi: (b, 0, 0)),       # y (kv source)
            pl.BlockSpec((D, qk_dim), lambda b, qi: (0, 0)),        # Wq * scale
            pl.BlockSpec((D, qk_dim), lambda b, qi: (0, 0)),        # Wk
            pl.BlockSpec((D, D), lambda b, qi: (0, 0)),             # Wv
        ]
        operands = (x, y, wq_s, wk, wv)

    out = pl.pallas_call(
        kernel,
        out_shape=jax.ShapeDtypeStruct((B, N, D), x.dtype),
        grid_spec=pltpu.PrefetchScalarGridSpec(
            num_scalar_prefetch=0,
            grid=(B, nq),
            in_specs=in_specs,
            out_specs=pl.BlockSpec((1, tq, D), lambda b, qi: (b, qi, 0)),
        ),
        compiler_params=pltpu.CompilerParams(
            dimension_semantics=("parallel", "parallel")),
    )(*operands)

    # Output is already (B, N, H*dv) = (B, N, D); no wrapper transpose needed.
    return out


def attention_reference(x, wq, wk, wv, heads, qk_dim, y=None):
    """Pure-JAX reference matching the PyTorch module semantics."""
    if y is None:
        y = x
    B, N, D = x.shape
    H = heads
    scale = float(qk_dim) ** (-0.5)
    q = x @ wq          # (B, N, qk_dim)
    k = y @ wk
    v = y @ wv          # (B, N, D)

    def split(t):
        return t.reshape(B, N, H, -1).transpose(0, 2, 1, 3)   # (B, H, N, d)

    q, k, v = split(q), split(k), split(v)
    attn = jnp.einsum('bhnd,bhmd->bhnm', q, k) * scale
    attn = jax.nn.softmax(attn, axis=-1)
    out = jnp.einsum('bhnm,bhmd->bhnd', attn, v)
    return out.transpose(0, 2, 1, 3).reshape(B, N, D)


if __name__ == "__main__":
    # Small deterministic setup: dim=64, heads=2, qk_dim=32, batch=2, seq=8.
    dim, heads, qk_dim = 64, 2, 32
    B, N = 2, 8

    key = jax.random.PRNGKey(0)
    kx, ky, kq, kk, kv = jax.random.split(key, 5)

    x = jax.random.normal(kx, (B, N, dim), dtype=jnp.float32)
    y = jax.random.normal(ky, (B, N, dim), dtype=jnp.float32)

    # nn.Linear(dim, out) weight is (out, dim); stored here transposed as (dim, out).
    wq = (jax.random.normal(kq, (dim, qk_dim), dtype=jnp.float32)
          * (1.0 / jnp.sqrt(dim)))
    wk = (jax.random.normal(kk, (dim, qk_dim), dtype=jnp.float32)
          * (1.0 / jnp.sqrt(dim)))
    wv = (jax.random.normal(kv, (dim, dim), dtype=jnp.float32)
          * (1.0 / jnp.sqrt(dim)))

    # Self-attention (y=None) and cross-attention paths.
    out_self = attention_pallas(x, wq, wk, wv, heads, qk_dim, y=None)
    out_cross = attention_pallas(x, wq, wk, wv, heads, qk_dim, y=y)
    jax.block_until_ready((out_self, out_cross))

    ref_self = attention_reference(x, wq, wk, wv, heads, qk_dim, y=None)
    ref_cross = attention_reference(x, wq, wk, wv, heads, qk_dim, y=y)

    assert out_self.shape == (B, N, dim)
    assert out_cross.shape == (B, N, dim)
    # Tolerance accounts for the approx-reciprocal softmax denominator (EUP vrcp).
    assert jnp.allclose(out_self, ref_self, atol=2e-3, rtol=2e-3)
    assert jnp.allclose(out_cross, ref_cross, atol=2e-3, rtol=2e-3)

    print("KERNEL_OK")
</pallas_src>

<mosaic_0001>
module attributes {stable_mosaic.version = 11 : i64} {
  func.func @_self_attn_kernel(%arg0: i32, %arg1: i32, %arg2: memref<1x8x64xf32, #tpu.memory_space<vmem>>, %arg3: memref<64x32xf32, #tpu.memory_space<vmem>>, %arg4: memref<64x32xf32, #tpu.memory_space<vmem>>, %arg5: memref<64x64xf32, #tpu.memory_space<vmem>>, %arg6: memref<1x8x64xf32, #tpu.memory_space<vmem>>) attributes {dimension_semantics = [#tpu.dimension_semantics<parallel>, #tpu.dimension_semantics<parallel>], iteration_bounds = array<i64: 2, 1>, scalar_prefetch = 0 : i64, scratch_operands = 0 : i64, tpu.core_type = #tpu.core_type<tc>, window_params = [{transform_indices = @transform_0, window_bounds = array<i64: 1, 8, 64>}, {pipeline_mode = #tpu.pipeline_mode<synchronous>, transform_indices = @transform_1, window_bounds = array<i64: 64, 32>}, {pipeline_mode = #tpu.pipeline_mode<synchronous>, transform_indices = @transform_2, window_bounds = array<i64: 64, 32>}, {pipeline_mode = #tpu.pipeline_mode<synchronous>, transform_indices = @transform_3, window_bounds = array<i64: 64, 64>}, {transform_indices = @transform_4, window_bounds = array<i64: 1, 8, 64>}]} {
    %c0 = arith.constant 0 : index
    %c0_0 = arith.constant 0 : index
    %c0_1 = arith.constant 0 : index
    %0 = vector.load %arg2[%c0, %c0_0, %c0_1] : memref<1x8x64xf32, #tpu.memory_space<vmem>>, vector<1x8x64xf32>
    %1 = vector.shape_cast %0 : vector<1x8x64xf32> to vector<8x64xf32>
    %c0_2 = arith.constant 0 : index
    %c0_3 = arith.constant 0 : index
    %2 = vector.load %arg3[%c0_2, %c0_3] : memref<64x32xf32, #tpu.memory_space<vmem>>, vector<64x32xf32>
    %c0_4 = arith.constant 0 : index
    %c0_5 = arith.constant 0 : index
    %3 = vector.load %arg4[%c0_4, %c0_5] : memref<64x32xf32, #tpu.memory_space<vmem>>, vector<64x32xf32>
    %c0_6 = arith.constant 0 : index
    %c0_7 = arith.constant 0 : index
    %4 = vector.load %arg5[%c0_6, %c0_7] : memref<64x64xf32, #tpu.memory_space<vmem>>, vector<64x64xf32>
    %cst = arith.constant dense<0.000000e+00> : vector<8x32xf32>
    %5 = tpu.matmul %1, %2, %cst {dimension_numbers = #tpu.dot_dimension_numbers<[1], [0], [0], [1], [0, 0, 1, 1], [], []>} : vector<8x64xf32>, vector<64x32xf32>, vector<8x32xf32> -> vector<8x32xf32>
    %cst_8 = arith.constant dense<0.000000e+00> : vector<8x32xf32>
    %6 = tpu.matmul %1, %3, %cst_8 {dimension_numbers = #tpu.dot_dimension_numbers<[1], [0], [0], [1], [0, 0, 1, 1], [], []>} : vector<8x64xf32>, vector<64x32xf32>, vector<8x32xf32> -> vector<8x32xf32>
    %cst_9 = arith.constant dense<0.000000e+00> : vector<8x64xf32>
    %7 = tpu.matmul %1, %4, %cst_9 {dimension_numbers = #tpu.dot_dimension_numbers<[1], [0], [0], [1], [0, 0, 1, 1], [], []>} : vector<8x64xf32>, vector<64x64xf32>, vector<8x64xf32> -> vector<8x64xf32>
    %8 = vector.extract_strided_slice %5 {offsets = [0, 0], sizes = [8, 16], strides = [1, 1]} : vector<8x32xf32> to vector<8x16xf32>
    %9 = vector.extract_strided_slice %6 {offsets = [0, 0], sizes = [8, 16], strides = [1, 1]} : vector<8x32xf32> to vector<8x16xf32>
    %10 = vector.extract_strided_slice %7 {offsets = [0, 0], sizes = [8, 32], strides = [1, 1]} : vector<8x64xf32> to vector<8x32xf32>
    %11 = tpu.transpose %9, [1, 0] : vector<8x16xf32> -> vector<16x8xf32>
    %cst_10 = arith.constant dense<0.000000e+00> : vector<8x8xf32>
    %12 = tpu.matmul %8, %11, %cst_10 {dimension_numbers = #tpu.dot_dimension_numbers<[1], [0], [0], [1], [0, 0, 1, 1], [], []>} : vector<8x16xf32>, vector<16x8xf32>, vector<8x8xf32> -> vector<8x8xf32>
    %cst_11 = arith.constant dense<0xFF800000> : vector<8xf32>
    %13 = vector.multi_reduction <maximumf>, %12, %cst_11 [1] : vector<8x8xf32> to vector<8xf32>
    %14 = vector.shape_cast %13 : vector<8xf32> to vector<8x1xf32>
    %15 = vector.broadcast %14 : vector<8x1xf32> to vector<8x8xf32>
    %16 = arith.subf %12, %15 : vector<8x8xf32>
    %17 = math.exp %16 : vector<8x8xf32>
    %cst_12 = arith.constant dense<0.000000e+00> : vector<8xf32>
    %18 = vector.multi_reduction <add>, %17, %cst_12 [1] : vector<8x8xf32> to vector<8xf32>
    %19 = vector.shape_cast %18 : vector<8xf32> to vector<8x1xf32>
    %20 = tpu.reciprocal %19 {approx = true} : vector<8x1xf32> -> vector<8x1xf32>
    %21 = vector.broadcast %20 : vector<8x1xf32> to vector<8x8xf32>
    %22 = arith.mulf %17, %21 : vector<8x8xf32>
    %cst_13 = arith.constant dense<0.000000e+00> : vector<8x32xf32>
    %23 = tpu.matmul %22, %10, %cst_13 {dimension_numbers = #tpu.dot_dimension_numbers<[1], [0], [0], [1], [0, 0, 1, 1], [], []>} : vector<8x8xf32>, vector<8x32xf32>, vector<8x32xf32> -> vector<8x32xf32>
    %24 = vector.extract_strided_slice %5 {offsets = [0, 16], sizes = [8, 16], strides = [1, 1]} : vector<8x32xf32> to vector<8x16xf32>
    %25 = vector.extract_strided_slice %6 {offsets = [0, 16], sizes = [8, 16], strides = [1, 1]} : vector<8x32xf32> to vector<8x16xf32>
    %26 = vector.extract_strided_slice %7 {offsets = [0, 32], sizes = [8, 32], strides = [1, 1]} : vector<8x64xf32> to vector<8x32xf32>
    %27 = tpu.transpose %25, [1, 0] : vector<8x16xf32> -> vector<16x8xf32>
    %cst_14 = arith.constant dense<0.000000e+00> : vector<8x8xf32>
    %28 = tpu.matmul %24, %27, %cst_14 {dimension_numbers = #tpu.dot_dimension_numbers<[1], [0], [0], [1], [0, 0, 1, 1], [], []>} : vector<8x16xf32>, vector<16x8xf32>, vector<8x8xf32> -> vector<8x8xf32>
    %cst_15 = arith.constant dense<0xFF800000> : vector<8xf32>
    %29 = vector.multi_reduction <maximumf>, %28, %cst_15 [1] : vector<8x8xf32> to vector<8xf32>
    %30 = vector.shape_cast %29 : vector<8xf32> to vector<8x1xf32>
    %31 = vector.broadcast %30 : vector<8x1xf32> to vector<8x8xf32>
    %32 = arith.subf %28, %31 : vector<8x8xf32>
    %33 = math.exp %32 : vector<8x8xf32>
    %cst_16 = arith.constant dense<0.000000e+00> : vector<8xf32>
    %34 = vector.multi_reduction <add>, %33, %cst_16 [1] : vector<8x8xf32> to vector<8xf32>
    %35 = vector.shape_cast %34 : vector<8xf32> to vector<8x1xf32>
    %36 = tpu.reciprocal %35 {approx = true} : vector<8x1xf32> -> vector<8x1xf32>
    %37 = vector.broadcast %36 : vector<8x1xf32> to vector<8x8xf32>
    %38 = arith.mulf %33, %37 : vector<8x8xf32>
    %cst_17 = arith.constant dense<0.000000e+00> : vector<8x32xf32>
    %39 = tpu.matmul %38, %26, %cst_17 {dimension_numbers = #tpu.dot_dimension_numbers<[1], [0], [0], [1], [0, 0, 1, 1], [], []>} : vector<8x8xf32>, vector<8x32xf32>, vector<8x32xf32> -> vector<8x32xf32>
    %40 = tpu.concatenate %23, %39 in 1 : vector<8x32xf32>, vector<8x32xf32> -> vector<8x64xf32>
    %c0_18 = arith.constant 0 : index
    %c0_19 = arith.constant 0 : index
    %c0_20 = arith.constant 0 : index
    %41 = vector.load %arg6[%c0_18, %c0_19, %c0_20] : memref<1x8x64xf32, #tpu.memory_space<vmem>>, vector<1x8x64xf32>
    %42 = vector.shape_cast %41 : vector<1x8x64xf32> to vector<8x64xf32>
    %43 = vector.shape_cast %40 : vector<8x64xf32> to vector<1x8x64xf32>
    tpu.vector_store %arg6[%c0_18, %c0_19, %c0_20], %43 {strides = array<i32>} : memref<1x8x64xf32, #tpu.memory_space<vmem>>, vector<1x8x64xf32>,
    return
  }
  func.func @transform_0(%arg0: i32, %arg1: i32) -> (i32, i32, i32) {
    %c0_i32 = arith.constant 0 : i32
    %c0_i32_0 = arith.constant 0 : i32
    %c0_i32_1 = arith.constant 0 : i32
    return %arg0, %c0_i32, %c0_i32_0 : i32, i32, i32
  }
  func.func @transform_1(%arg0: i32, %arg1: i32) -> (i32, i32) {
    %c0_i32 = arith.constant 0 : i32
    %c0_i32_0 = arith.constant 0 : i32
    %c0_i32_1 = arith.constant 0 : i32
    return %c0_i32, %c0_i32_0 : i32, i32
  }
  func.func @transform_2(%arg0: i32, %arg1: i32) -> (i32, i32) {
    %c0_i32 = arith.constant 0 : i32
    %c0_i32_0 = arith.constant 0 : i32
    %c0_i32_1 = arith.constant 0 : i32
    return %c0_i32, %c0_i32_0 : i32, i32
  }
  func.func @transform_3(%arg0: i32, %arg1: i32) -> (i32, i32) {
    %c0_i32 = arith.constant 0 : i32
    %c0_i32_0 = arith.constant 0 : i32
    %c0_i32_1 = arith.constant 0 : i32
    return %c0_i32, %c0_i32_0 : i32, i32
  }
  func.func @transform_4(%arg0: i32, %arg1: i32) -> (i32, i32, i32) {
    %c0_i32 = arith.constant 0 : i32
    %c0_i32_0 = arith.constant 0 : i32
    return %arg0, %arg1, %c0_i32 : i32, i32, i32
  }
}

</mosaic_0001>

<bundles_post_ra>
// kernel: tpu_custom_call.1
= control target key start
LH: loop header
LB: loop body
LE: loop exit
PB: predicated region body
PF: predicated region fallthrough
CT: control target
= control target key end

     0   :  { %9 = vsyncpa [#allocation3], 0  ;;  %s1408_s0 = inlined_call_operand.vmem [shape: f32[2,8,64], index: 0, kind: input, shape index: {}]   ;;  %s1409_s1 = inlined_call_operand.vmem [shape: f32[64,32], index: 1, kind: input, shape index: {}]   ;;  %s1410_s2 = inlined_call_operand.vmem [shape: f32[64,32], index: 2, kind: input, shape index: {}]   ;;  %s1411_s3 = inlined_call_operand.vmem [shape: f32[64,64], index: 3, kind: input, shape index: {}]   ;;  %s1412_s4 = inlined_call_operand.hbm [shape: f32[2,8,64], index: 4, kind: output, shape index: {}]  }
   0x1   :  { %11 = vsyncpa [#allocation3 + $0x1], 0  ;;  %s1173_s15 = smov 0   ;;  %s1175_s16 = smov 0  }
   0x2   :  { %s1177_s17 = smov 0   ;;  %s1179_s18 = smov 0  }
   0x3   :  { %s1181_s19 = smov 0   ;;  %s1183_s20 = smov 0  }
   0x4 LB: > { %s864_s21 = sadd.s32 4294967295, %s1140_s20   ;;  %s865_s22 = sadd.s32 4294967294, %s1140_s20   ;;  %s1140_s20 = sphi %s1183_s20, %s17_s20   ;;  %s1136_s19 = sphi %s1181_s19, %s1419_s19   ;;  %s1132_s18 = sphi %s1179_s18, %s1418_s18   ;;  %s1128_s17 = sphi %s1177_s17, %s1417_s17   ;;  %s1124_s16 = sphi %s1175_s16, %s1416_s16   ;;  %s1120_s15 = sphi %s1173_s15, %s1415_s15  }
   0x5   : > { %s29_s23 = sadd.s32 1, %s1136_s19  ;;  %s127_s24 = sadd.s32 1, %s1128_s17 }
   0x6   : > { %p31_p0 = scmp.ge.s32.totalorder %s29_s23, 2  ;;  %p137_p1 = scmp.ne.s32.totalorder %s1128_s17, %s1124_s16 }
   0x7   : > { %p138_p2 = scmp.eq.s32.totalorder %s864_s21, 1  ;;  %p143_p3 = scmp.ne.s32.totalorder %s1124_s16, %s1120_s15 }
   0x8   : > { %s1421_s23 = smov (%p31_p0, %s29_s23), 0  ;;  %p144_p5 = scmp.eq.s32.totalorder %s865_s22, 1 }
   0x9   : > { %p1213_p4 = por %p138_p2, %p137_p1  ;;  %s122_s26 = ssub.s32 %s1136_s19, %s1421_s23 }
   0xa   : > { %p868_p6 = scmp.ge.s32.totalorder %s1140_s20, 1  ;;  %p125_p7 = scmp.eq.s32.totalorder %s122_s26, 0 }
   0xb   : > { %p1220_p8 = por %p144_p5, %p143_p3  ;;  %p178_p9 = scmp.lt.s32.totalorder %s1140_s20, 3 }
   0xc   : > { %s1226_s28 = scalar_select %p125_p7, %s1128_s17, %s127_s24  }
   0xd   : > { %p179_p10 = pnand %p868_p6, %p178_p9 }
   0xe   : > { %p203_p11 = scmp.lt.s32.totalorder (!%p179_p10), %s1132_s18, 1  ;;  %s1145_s9 = smov (!%p179_p10), 96  }
   0xf   : > { %182 = sbr.rel (%p179_p10) target bundleno = 1569 (0x621), region = 36  ;;  %s1146_s10 = smov (!%p179_p10), 32  }
  0x10   : > { %s200_s11 = sand.u32 (!%p179_p10), 1, %s1124_s16   ;;  %s881_s13 = sshll.u32 (!%p179_p10), %s1132_s18, 7 }
  0x11   : > { %s869_s12 = sshll.u32 (!%p179_p10), %s200_s11, 3  ;;  %s1367_s26 = scalar_lea.hbm (!%p179_p10), %s1412_s4, %s881_s13 }
  0x12   : > { %s202_s14 = scalar_lea.vmem (!%p179_p10), [#allocation2], %s869_s12 }
  0x14   : > { %v223_v0 = vld [vmem:[%s1410_s2 + $0x38] sm:$0xff]  ;;  %v1142_v2 = vmov 0.0   ;;  %v222_v3 = vld [vmem:[%s1410_s2 + $0x30] sm:$0xff]  ;;  %v221_v5 = vld [vmem:[%s1410_s2 + $0x28] sm:$0xff]  ;;  %s204_s21 = scalar_select %p203_p11, %s1132_s18, 1  ;;  %vm232_vm0 = vcmask 523264  }
  0x15   : > { %v215_v1 = vld [vmem:[%s1409_s1 + $0x38] sm:$0xff]  ;;  %938 = vmatprep.subr.mxu1 %v1142_v2  ;;  %919 = vmatprep.subr.mxu0 %v1142_v2  ;;  %v214_v4 = vld [vmem:[%s1409_s1 + $0x30] sm:$0xff]  ;;  %v213_v6 = vld [vmem:[%s1409_s1 + $0x28] sm:$0xff]  ;;  %vm1143_vm1 = vmmov 0   ;;  %vm446_vm2 = vcmask 130048   ;;  %vm523_vm3 = vcmask 64512  }
  0x16   : > { %939 = vmatpush3.msra.mxu1 %v223_v0  ;;  %920 = vmatpush3.msra.mxu0 %v215_v1  ;;  %v220_v7 = vld [vmem:[%s1410_s2 + $0x20] sm:$0xff]  ;;  %v219_v9 = vld [vmem:[%s1410_s2 + $0x18] sm:$0xff]  ;;  %s870_s8 = sshll.u32 %s204_s21, 3  ;;  %v218_v11 = vld [vmem:[%s1410_s2 + $0x10] sm:$0xff]  ;;  %s796_s21 = sshll.u32 %s202_s14, 4  ;;  %vm778_vm4 = vcmask 261120   ;;  %s797_s21 = int_to_ptr.vmem [resolvable:$true] %s796_s21 }
  0x17   : > { %940 = vmatprep.subr.mxu1 %v1142_v2  ;;  %921 = vmatprep.subr.mxu0 %v1142_v2  ;;  %v212_v8 = vld [vmem:[%s1409_s1 + $0x20] sm:$0xff]  ;;  %v211_v10 = vld [vmem:[%s1409_s1 + $0x18] sm:$0xff]  ;;  %v210_v12 = vld [vmem:[%s1409_s1 + $0x10] sm:$0xff]  ;;  %s206_s29 = scalar_lea.vmem %s1408_s0, %s870_s8  ;;  %s1144_s8 = smov 112  }
  0x18   : > { %941 = vmatpush3.msra.mxu1 %v222_v3  ;;  %922 = vmatpush3.msra.mxu0 %v214_v4  ;;  %v217_v13 = vld [vmem:[%s1410_s2 + $0x8] sm:$0xff]  ;;  %v216_v15 = vld [vmem:[%s1410_s2] sm:$0xff]  ;;  %v231_v22 = vld [vmem:[%s1411_s3 + $0x38] sm:$0xff]  ;;  %s1064_s30 = scalar_lea.vmem %s797_s21, 128  ;;  %s1147_s18 = smov [#allocation2]  }
  0x19   : > { %942 = vmatprep.subr.mxu1 %v1142_v2  ;;  %923 = vmatprep.subr.mxu0 %v1142_v2  ;;  %v209_v14 = vld [vmem:[%s1409_s1 + $0x8] sm:$0xff]  ;;  %v207_v16 = vld [vmem:[%s206_s29] sm:$0xff]  ;;  %v230_v23 = vld [vmem:[%s1411_s3 + $0x30] sm:$0xff]  ;;  %s782_s29 = scalar_lea.sflag [#allocation3], %s200_s11  ;;  %p1065_p12 = scmp.ne.s32.totalorder %s797_s21, %s1064_s30 }
  0x1a   : > { %943 = vmatpush3.msra.mxu1 %v221_v5  ;;  %924 = vmatpush3.msra.mxu0 %v213_v6  ;;  %v208_v17 = vld [vmem:[%s1409_s1] sm:$0xff]  ;;  %v229_v24 = vld [vmem:[%s1411_s3 + $0x28] sm:$0xff]  ;;  %v227_v26 = vld [vmem:[%s1411_s3 + $0x18] sm:$0xff]  ;;  %s1068_s5 = sshll.u32 %s1147_s18, 4  ;;  %s1069_s5 = int_to_ptr.vmem [resolvable:$false] %s1068_s5 }
  0x1b   : > { %944 = vmatprep.subr.mxu1 %v1142_v2  ;;  %925 = vmatprep.subr.mxu0 %v1142_v2  ;;  %v228_v25 = vld [vmem:[%s1411_s3 + $0x20] sm:$0xff]  ;;  %v226_v27 = vld [vmem:[%s1411_s3 + $0x10] sm:$0xff]  ;;  %v225_v28 = vld [vmem:[%s1411_s3 + $0x8] sm:$0xff]  ;;  %p1066_p13 = pnand %p1065_p12, %p1213_p4  ;;  %s1070_s6 = scalar_lea.vmem %s1069_s5, 256 }
  0x1c   : > { %945 = vmatpush3.msra.mxu1 %v220_v7  ;;  %926 = vmatpush3.msra.mxu0 %v212_v8  ;;  %v224_v29 = vld [vmem:[%s1411_s3] sm:$0xff]  ;;  %p1071_p1 = scmp.lt.s32.totalorder %s797_s21, %s1069_s5  ;;  %p1072_p2 = scmp.lt.s32.totalorder %s1070_s6, %s1064_s30 }
  0x1d   : > { %946 = vmatprep.subr.mxu1 %v1142_v2  ;;  %927 = vmatprep.subr.mxu0 %v1142_v2  ;;  %p1067_p0 = pneg %p1066_p13 }
  0x1e   : > { %947 = vmatpush3.msra.mxu1 %v219_v9  ;;  %928 = vmatpush3.msra.mxu0 %v211_v10  ;;  %p1073_p3 = por %p1072_p2, %p1071_p1 }
  0x1f   : > { %948 = vmatprep.subr.mxu1 %v1142_v2  ;;  %929 = vmatprep.subr.mxu0 %v1142_v2 }
  0x20   : > { %949 = vmatpush3.msra.mxu1 %v218_v11  ;;  %930 = vmatpush3.msra.mxu0 %v210_v12  ;;  %p1074_p5 = pnand %p1073_p3, %p1067_p0 }
  0x21   : > { %950 = vmatprep.subr.mxu1 %v1142_v2  ;;  %931 = vmatprep.subr.mxu0 %v1142_v2 }
  0x22   : > { %951 = vmatpush3.msra.mxu1 %v217_v13  ;;  %932 = vmatpush3.msra.mxu0 %v209_v14 }
  0x23   : > { %952 = vmatprep.subr.mxu1 %v1142_v2  ;;  %954 = vmatprep.mubr.msk.f32.mxu1 %vm1143_vm1, %v1142_v2 }
  0x24   : > { %953 = vmatpush3.msra.mxu1 %v216_v15  ;;  %933 = vmatprep.subr.mxu0 %v1142_v2 }
  0x25   : > { %955 = vmatmul.mubr.msk.f32.vlgmr.msra.gmra.mxu1 %vm232_vm0, %v207_v16  ;;  %934 = vmatpush3.msra.mxu0 %v208_v17 }
  0x26   : > { %935 = vmatprep.mubr.msk.f32.mxu0 %vm1143_vm1, %v1142_v2  ;;  %976 = vmatprep.subr.mxu1 %v1142_v2 }
  0x27   : > { %936 = vmatmul.mubr.msk.f32.vlgmr.msra.gmra.mxu0 %vm232_vm0, %v207_v16  ;;  %978 = vmatprep.mubr.msk.f32.mxu1 %vm1143_vm1, %v1142_v2 }
  0x28   : > { %957 = vmatprep.subr.mxu0 %v1142_v2  ;;  %973 = vmatprep.mubr.msk.f32.mxu0 %vm1143_vm1, %v1142_v2 }
  0x29   : > { %958 = vmatpush3.msra.mxu0 %v231_v22 }
  0x2a   : > { %959 = vmatprep.subr.mxu0 %v1142_v2 }
  0x2b   : > { %960 = vmatpush3.msra.mxu0 %v230_v23 }
  0x2c   : > { %961 = vmatprep.subr.mxu0 %v1142_v2 }
  0x2d   : > { %962 = vmatpush3.msra.mxu0 %v229_v24 }
  0x2e   : > { %963 = vmatprep.subr.mxu0 %v1142_v2 }
  0x2f   : > { %964 = vmatpush3.msra.mxu0 %v228_v25 }
  0x30   : > { %965 = vmatprep.subr.mxu0 %v1142_v2 }
  0x31   : > { %966 = vmatpush3.msra.mxu0 %v227_v26 }
  0x32   : > { %967 = vmatprep.subr.mxu0 %v1142_v2 }
  0x33   : > { %968 = vmatpush3.msra.mxu0 %v226_v27 }
  0x34   : > { %969 = vmatprep.subr.mxu0 %v1142_v2 }
  0x35   : > { %970 = vmatpush3.msra.mxu0 %v225_v28 }
  0x36   : > { %971 = vmatprep.subr.mxu0 %v1142_v2 }
  0x37   : > { %972 = vmatpush3.msra.mxu0 %v224_v29 }
  0x38   : > { %974 = vmatmul.mubr.msk.f32.vlgmr.msra.gmra.mxu0 %vm232_vm0, %v207_v16 }
  0xe5   : > { %v372_v18 = vpop.f32.mrf.mxu1 }
  0xe6   : > { %610 = vrot.lane.b32.xlu1 %v372_v18, %s1144_s8  ;;  %977 = vmatpush3.xpose.msk.msra.mxu1 %vm446_vm2, %v372_v18 }
  0xe7   : > { %v302_v19 = vpop.f32.mrf.mxu0  ;;  %v956_v20 = vpop.f32.mrf.mxu1  ;;  %981 = vmatprep.subr.mxu1 %v1142_v2 }
  0xe9   : > { %v937_v21 = vpop.f32.mrf.mxu0  ;;  %979 = vmatmul.mubr.msk.f32.vlgmr.msra.gmra.mxu1 %vm446_vm2, %v302_v19 }
  0xea   : > { %608 = vrot.lane.b32.xlu1 %v302_v19, %s1144_s8  ;;  %983 = vmatprep.mubr.msk.f32.mxu1 %vm1143_vm1, %v1142_v2 }
  0xf8   : > { %v442_v38 = vpop.f32.mrf.mxu0 }
  0xf9   : > { %982 = vmatpush3.msra.mxu1 %v442_v38 }
  0xfa   : > { %v975_v39 = vpop.f32.mrf.mxu0  ;;  %986 = vmatprep.subr.mxu1 %v1142_v2 }
 0x158   : > { %v611_v42 = vpop.permute.xlu1 %610 }
 0x15c   : > { %v609_v44 = vpop.permute.xlu1 %608 }
 0x1a9   : > { %v519_v30 = vpop.f32.mrf.mxu1 }
 0x1aa   : > { %v524_v31 = vsel %vm523_vm3, %v519_v30, -inf }
 0x1ab   : > { %525 = vmax.xlane.f32.xlu0 %v524_v31  ;;  %v980_v32 = vpop.f32.mrf.mxu1 }
 0x234   : > { %v526_v33 = vpop.xlane.xlu0 %525 }
 0x235   : > { %v527_v34 = vsub.f32 %v519_v30, %v526_v33 }
 0x237   : > { %v528_v35 = vmul.f32 1.442695, %v527_v34 }
 0x239   : > { %1056 = vpow2.f32 %v528_v35 }
 0x246   : > { %v1057_v36 = vpop.eup %1056 }
 0x247   : > { %v530_v37 = vsel %vm523_vm3, %v1057_v36, 0.0 }
 0x248   : > { %531 = vadd.xlane.f32.xlu0 %v530_v37 }
 0x2d1   : > { %v532_v40 = vpop.xlane.xlu0 %531 }
 0x2d2   : > { %1058 = vrcp.f32 %v532_v40 }
 0x2df   : > { %v1059_v41 = vpop.eup %1058 }
 0x2e0   : > { %v534_v43 = vmul.f32 %v1059_v41, %v1057_v36 }
 0x2e2   : > { %984 = vmatmul.mubr.msk.f32.vlgmr.msra.gmra.mxu1 %vm523_vm3, %v534_v43 }
 0x2e3   : > { %987 = vmatpush3.xpose.msk.msra.mxu1 %vm446_vm2, %v611_v42  ;;  %988 = vmatprep.mubr.msk.f32.mxu1 %vm1143_vm1, %v1142_v2 }
 0x2e4   : > { %991 = vmatprep.subr.mxu1 %v1142_v2 }
 0x2e6   : > { %989 = vmatmul.mubr.msk.f32.vlgmr.msra.gmra.mxu1 %vm446_vm2, %v609_v44 }
 0x2e7   : > { %993 = vmatprep.mubr.msk.f32.mxu1 %vm1143_vm1, %v1142_v2 }
 0x3a2   : > { %v604_v45 = vpop.f32.mrf.mxu1 }
 0x3a4   : > { %v985_v46 = vpop.f32.mrf.mxu1 }
 0x3a6   : > { %v682_v47 = vpop.f32.mrf.mxu1 }
 0x3a7   : > { %v686_v48 = vsel %vm523_vm3, %v682_v47, -inf }
 0x3a8   : > { %687 = vmax.xlane.f32.xlu0 %v686_v48  ;;  %v990_v49 = vpop.f32.mrf.mxu1 }
 0x3be   : > { %698 = vrot.lane.b32.xlu0 %v442_v38, %s1145_s9 }
 0x431   : > { %v688_v50 = vpop.xlane.xlu0 %687 }
 0x432   : > { %v689_v51 = vsub.f32 %v682_v47, %v688_v50 }
 0x434   : > { %v690_v52 = vmul.f32 1.442695, %v689_v51 }
 0x435   : > { %v699_v53 = vpop.permute.xlu0 %698 }
 0x436   : > { %1060 = vpow2.f32 %v690_v52  ;;  %992 = vmatpush3.msra.mxu1 %v699_v53 }
 0x443   : > { %v1061_v54 = vpop.eup %1060 }
 0x444   : > { %v692_v55 = vsel %vm523_vm3, %v1061_v54, 0.0 }
 0x445   : > { %693 = vadd.xlane.f32.xlu1 %v692_v55 }
 0x4ce   : > { %v694_v56 = vpop.xlane.xlu1 %693 }
 0x4cf   : > { %1062 = vrcp.f32 %v694_v56 }
 0x4dc   : > { %v1063_v57 = vpop.eup %1062 }
 0x4dd   : > { %v696_v58 = vmul.f32 %v1063_v57, %v1061_v54 }
 0x4df   : > { %994 = vmatmul.mubr.msk.f32.vlgmr.msra.gmra.mxu1 %vm523_vm3, %v696_v58 }
 0x59f   : > { %v770_v59 = vpop.f32.mrf.mxu1 }
 0x5a0   : > { %775 = vrot.lane.b32.xlu0 %v770_v59, %s1146_s10 }
 0x5a1   : > { %v995_v60 = vpop.f32.mrf.mxu1 }
 0x612   : > { %v776_v61 = vpop.permute.xlu0 %775 }
 0x613   : > { %v779_v62 = vsel %vm778_vm4, %v604_v45, %v776_v61 }
 0x614   : > { %780 = vst.msk [vmem:[%s202_s14] sm:$0xff] %vm232_vm0, %v779_v62 }
 0x615   : > { %1077 = shalt.err (!%p1074_p5)
}
 0x616   : > { %s1078_s7 = scalar_lea.hbm %s1367_s26, 128  ;;  %s1082_s10 = scalar_lea.hbm %s1412_s4, 256 }
 0x617   : > { %p1079_p6 = scmp.ne.s32.totalorder %s1367_s26, %s1078_s7  ;;  %p1083_p10 = scmp.lt.s32.totalorder %s1367_s26, %s1412_s4 }
 0x618   : > { %p1084_p11 = scmp.lt.s32.totalorder %s1082_s10, %s1078_s7 }
 0x619   : > { %p1080_p7 = pnand %p1079_p6, %p1213_p4 }
 0x61a   : > { %p1085_p12 = por %p1084_p11, %p1083_p10 }
 0x61b   : > { %p1081_p9 = pneg %p1080_p7 }
 0x61d   : > { %p1086_p13 = pnand %p1085_p12, %p1081_p9 }
 0x61f   : > { %1089 = shalt.err (!%p1086_p13)
}
 0x620   : > { %996 = dma.vmem_to_hbm [thread:$0]  (%p1213_p4), %s797_s21, 128, %s1367_s26, %s782_s29  }
 0x621 PF: > { %p1002_p0 = scmp.ge.s32.totalorder %s1140_s20, 2  ;;  %s808_s13 = sand.u32 1, %s1120_s15  }
 0x622   : > { %s809_s14 = scalar_lea.sflag [#allocation3], %s808_s13 }
 0x623   : > { %p999_p1 = pnand %p1002_p0, %p1220_p8 }
 0x625   : > { %p1000_p2 = pneg %p999_p1 }
 0x627   : > { %1115 = dma.done.wait (%p1000_p2), %s809_s14, 128  }
 0x628   : > { %1117 = vsyncadd (%p1000_p2), %s809_s14, 4294967168  ;;  %s17_s20 = sadd.s32 1, %s1140_s20   ;;  %s1415_s15 = smov %s1124_s16 }
 0x629   : > { %p14_p3 = scmp.ge.s32.totalorder %s17_s20, 4   ;;  %s1416_s16 = smov %s1128_s17 }
 0x62a   : > { %s1417_s17 = smov %s1226_s28  ;;  %s1418_s18 = smov %s1136_s19 }
 0x62b   : > { %s1419_s19 = smov %s1421_s23  ;;  %16 = sbr.rel (!%p14_p3) target bundleno = 4 (0x4), region = 71 }
 0x630   :  { %814 = vsyncpa [#allocation3], 1 }
 0x631   :  { %816 = vsyncpa [#allocation3 + $0x1], 1 }

</bundles_post_ra>
